<compile_context>
chip_gen: v6e
topology: v6e:2x2x1
jax: 0.10.0
libtpu: 0.0.40
codegen_flags: <defaults>
</compile_context>

<pallas_src>
import functools
import math

import jax
import jax.numpy as jnp
from jax.experimental import pallas as pl
from jax.experimental.pallas import tpu as pltpu


# ============================================================================
# Path 1: fully fused AE forward (small graphs -- everything resident in VMEM)
# ============================================================================
def _ae_fused_kernel(g_ref, x_ref, w1t_ref, wmut_ref, wlvt_ref, w3t_ref,
                     w4t_ref, mu_ref, logvar_ref, recon_ref):
    g = g_ref[...]

    # conv1 (feat -> hid, relu).  Dout <= Din: project first so the N^2 matmul
    # runs over hid columns instead of feat columns.
    xw1 = jnp.dot(x_ref[...], w1t_ref[...], preferred_element_type=jnp.float32)
    h1 = jnp.maximum(jnp.dot(g, xw1, preferred_element_type=jnp.float32), 0.0)

    # mu / logvar: share ax = g @ h1 (computed ONCE), then two small matmuls.
    ax = jnp.dot(g, h1, preferred_element_type=jnp.float32)
    mu = jax.nn.sigmoid(jnp.dot(ax, wmut_ref[...],
                                preferred_element_type=jnp.float32))
    logvar = jax.nn.sigmoid(jnp.dot(ax, wlvt_ref[...],
                                    preferred_element_type=jnp.float32))
    mu_ref[...] = mu.astype(mu_ref.dtype)
    logvar_ref[...] = logvar.astype(logvar_ref.dtype)

    # reparameterize (eval): z = mu
    # conv3 (out -> hid, relu).  Din < Dout: g @ z first.
    gz = jnp.dot(g, mu, preferred_element_type=jnp.float32)
    d1 = jnp.maximum(jnp.dot(gz, w3t_ref[...],
                             preferred_element_type=jnp.float32), 0.0)

    # conv4 (hid -> feat, sigmoid).  Din < Dout: g @ d1 first.
    gd = jnp.dot(g, d1, preferred_element_type=jnp.float32)
    recon = jax.nn.sigmoid(jnp.dot(gd, w4t_ref[...],
                                   preferred_element_type=jnp.float32))
    recon_ref[...] = recon.astype(recon_ref.dtype)


def _ae_forward_fused(params, g, x):
    n, feat = x.shape
    hid = params["w1t"].shape[1]
    out = params["wmut"].shape[1]

    def full(shape):
        return pl.BlockSpec(shape, lambda: (0,) * len(shape))

    return pl.pallas_call(
        _ae_fused_kernel,
        out_shape=(
            jax.ShapeDtypeStruct((n, out), jnp.float32),   # mu
            jax.ShapeDtypeStruct((n, out), jnp.float32),   # logvar
            jax.ShapeDtypeStruct((n, feat), jnp.float32),  # recon
        ),
        in_specs=[
            full((n, n)),        # g
            full((n, feat)),     # x
            full((feat, hid)),   # W1^T
            full((hid, out)),    # Wmu^T
            full((hid, out)),    # Wlogvar^T
            full((out, hid)),    # W3^T
            full((hid, feat)),   # W4^T
        ],
        out_specs=(full((n, out)), full((n, out)), full((n, feat))),
    )(g, x, params["w1t"], params["wmut"], params["wlvt"],
      params["w3t"], params["w4t"])


# ============================================================================
# Path 2: tiled GraphConv for large graphs
#   grid = (N/TM rows  [parallel],  N/TK reduction  [arbitrary])
#   f32 VMEM accumulator, activation + second matmul on the final K step.
# ============================================================================
def _graphconv_tiled_kernel(g_ref, x_ref, wt_ref, o_ref, acc_ref, *,
                            activation, project_first):
    k = pl.program_id(1)

    @pl.when(k == 0)
    def _():
        acc_ref[...] = jnp.zeros_like(acc_ref)

    if project_first:
        # acc += g_tile @ (x_tile @ W^T)   -- N^2 matmul over Dout columns
        xw = jnp.dot(x_ref[...], wt_ref[...], preferred_element_type=jnp.float32)
        acc_ref[...] += jnp.dot(g_ref[...], xw, preferred_element_type=jnp.float32)
    else:
        # acc += g_tile @ x_tile           -- N^2 matmul over Din columns
        acc_ref[...] += jnp.dot(g_ref[...], x_ref[...],
                                preferred_element_type=jnp.float32)

    @pl.when(k == pl.num_programs(1) - 1)
    def _():
        y = acc_ref[...]
        if not project_first:
            y = jnp.dot(y, wt_ref[...], preferred_element_type=jnp.float32)
        if activation == "relu":
            y = jnp.maximum(y, 0.0)
        elif activation == "sigmoid":
            y = jax.nn.sigmoid(y)
        o_ref[...] = y.astype(o_ref.dtype)


def graph_conv_tiled(g, x, wt, activation=None, *, tm=256, tk=512):
    """One GraphConv layer, tiled over the (N, N) adjacency."""
    n, din = x.shape
    dout = wt.shape[1]
    tm = min(tm, n)
    tk = min(tk, n)
    assert n % tm == 0 and n % tk == 0, "N must be divisible by the tile sizes"
    assert tm % 8 == 0, "row tile must be a multiple of 8"
    assert tk % 128 == 0 or tk == n, "K tile must be a multiple of 128 (or == N)"

    # Put the smaller of (Din, Dout) on the N^2 matmul.
    project_first = dout <= din
    acc_cols = dout if project_first else din

    kernel = functools.partial(_graphconv_tiled_kernel,
                               activation=activation,
                               project_first=project_first)
    return pl.pallas_call(
        kernel,
        out_shape=jax.ShapeDtypeStruct((n, dout), jnp.float32),
        grid_spec=pltpu.PrefetchScalarGridSpec(
            num_scalar_prefetch=0,
            grid=(n // tm, n // tk),
            in_specs=[
                pl.BlockSpec((tm, tk), lambda i, k: (i, k)),     # g tile (streamed)
                pl.BlockSpec((tk, din), lambda i, k: (k, 0)),    # x rows for this k
                pl.BlockSpec((din, dout), lambda i, k: (0, 0)),  # weight (resident)
            ],
            out_specs=pl.BlockSpec((tm, dout), lambda i, k: (i, 0)),
            scratch_shapes=[pltpu.VMEM((tm, acc_cols), jnp.float32)],
        ),
        compiler_params=pltpu.CompilerParams(
            dimension_semantics=("parallel", "arbitrary"),
            # Portable budget: well under v7x's 64 MiB physical VMEM,
            # generous headroom for double-buffered g tiles on v5e/v6e.
            vmem_limit_bytes=48 * 1024 * 1024,
        ),
    )(g, x, wt)


def _ae_forward_tiled(params, g, x, *, tm=256, tk=512):
    out = params["wmut"].shape[1]
    h1 = graph_conv_tiled(g, x, params["w1t"], "relu", tm=tm, tk=tk)
    # Fused mu/logvar: one pass over g, lane-denser (2*out wide) output.
    wmlt = jnp.concatenate([params["wmut"], params["wlvt"]], axis=1)
    ml = graph_conv_tiled(g, h1, wmlt, "sigmoid", tm=tm, tk=tk)
    mu, logvar = ml[:, :out], ml[:, out:]
    d1 = graph_conv_tiled(g, mu, params["w3t"], "relu", tm=tm, tk=tk)
    recon = graph_conv_tiled(g, d1, params["w4t"], "sigmoid", tm=tm, tk=tk)
    return mu, logvar, recon


# ============================================================================
# Dispatcher
# ============================================================================
def ae_forward(params, g, x, *, fused_vmem_budget=12 * 1024 * 1024):
    n, feat = x.shape
    hid = params["w1t"].shape[1]
    out = params["wmut"].shape[1]
    # Rough f32 VMEM estimate for the fully fused kernel (3x slack for temporaries).
    est_bytes = 4 * 3 * (n * n + n * (feat + 2 * hid + 2 * out)
                         + feat * hid + 2 * hid * out + out * hid + hid * feat)
    if est_bytes <= fused_vmem_budget:
        return _ae_forward_fused(params, g, x)
    return _ae_forward_tiled(params, g, x)


# ============================================================================
# Parameter init (xavier_uniform, stored directly in W^T = (Din, Dout) layout)
# ============================================================================
def xavier_uniform_t(key, in_dim, out_dim):
    limit = math.sqrt(6.0 / (in_dim + out_dim))
    return jax.random.uniform(key, (in_dim, out_dim), dtype=jnp.float32,
                              minval=-limit, maxval=limit)


def init_ae_params(key, feat_dim, hid_dim, out_dim):
    k1, k2, k3, k4, k5 = jax.random.split(key, 5)
    return {
        "w1t": xavier_uniform_t(k1, feat_dim, hid_dim),   # conv1: feat -> hid
        "wmut": xavier_uniform_t(k2, hid_dim, out_dim),   # mu:    hid  -> out
        "wlvt": xavier_uniform_t(k3, hid_dim, out_dim),   # logvar:hid  -> out
        "w3t": xavier_uniform_t(k4, out_dim, hid_dim),    # conv3: out  -> hid
        "w4t": xavier_uniform_t(k5, hid_dim, feat_dim),   # conv4: hid  -> feat
    }


# ============================================================================
# Pure-JAX reference (matches PyTorch eval-mode semantics)
# ============================================================================
def ae_forward_ref(params, g, x):
    def gc(adj, h, wt, act):
        y = (adj @ h) @ wt
        return jnp.maximum(y, 0.0) if act == "relu" else jax.nn.sigmoid(y)

    h1 = gc(g, x, params["w1t"], "relu")
    mu = gc(g, h1, params["wmut"], "sigmoid")
    logvar = gc(g, h1, params["wlvt"], "sigmoid")
    d1 = gc(g, mu, params["w3t"], "relu")
    recon = gc(g, d1, params["w4t"], "sigmoid")
    return mu, logvar, recon


# ============================================================================
if __name__ == "__main__":
    FEAT, HID, OUT = 32, 16, 8

    def make_inputs(key, n):
        k_g, k_x = jax.random.split(key)
        a = jax.random.uniform(k_g, (n, n), dtype=jnp.float32)
        a = (a + a.T) * 0.5 + jnp.eye(n, dtype=jnp.float32)
        g = a / jnp.sum(a, axis=1, keepdims=True)   # row-normalized adjacency
        x = jax.random.normal(k_x, (n, FEAT), dtype=jnp.float32)
        return g, x

    key = jax.random.PRNGKey(0)
    k_small, k_large, k_p = jax.random.split(key, 3)
    params = init_ae_params(k_p, FEAT, HID, OUT)

    # ---- small graph: single fully fused kernel ------------------------------
    N_S = 16
    g_s, x_s = make_inputs(k_small, N_S)
    mu, logvar, recon = ae_forward(params, g_s, x_s)
    jax.block_until_ready((mu, logvar, recon))

    mu_r, lv_r, rec_r = ae_forward_ref(params, g_s, x_s)
    assert mu.shape == (N_S, OUT) and logvar.shape == (N_S, OUT)
    assert recon.shape == (N_S, FEAT)
    assert jnp.allclose(mu, mu_r, atol=5e-5)
    assert jnp.allclose(logvar, lv_r, atol=5e-5)
    assert jnp.allclose(recon, rec_r, atol=5e-5)

    # ---- larger graph: tiled path (row-parallel grid + K reduction) ----------
    N_L = 512
    g_l, x_l = make_inputs(k_large, N_L)
    mu2, logvar2, recon2 = _ae_forward_tiled(params, g_l, x_l, tm=256, tk=256)
    jax.block_until_ready((mu2, logvar2, recon2))

    mu2_r, lv2_r, rec2_r = ae_forward_ref(params, g_l, x_l)
    assert mu2.shape == (N_L, OUT) and recon2.shape == (N_L, FEAT)
    assert jnp.allclose(mu2, mu2_r, atol=1e-4)
    assert jnp.allclose(logvar2, lv2_r, atol=1e-4)
    assert jnp.allclose(recon2, rec2_r, atol=1e-4)

    print("KERNEL_OK")
</pallas_src>

<mosaic_0001>
module attributes {stable_mosaic.version = 11 : i64} {
  func.func @_ae_fused_kernel(%arg0: memref<16x16xf32, #tpu.memory_space<vmem>>, %arg1: memref<16x32xf32, #tpu.memory_space<vmem>>, %arg2: memref<32x16xf32, #tpu.memory_space<vmem>>, %arg3: memref<16x8xf32, #tpu.memory_space<vmem>>, %arg4: memref<16x8xf32, #tpu.memory_space<vmem>>, %arg5: memref<8x16xf32, #tpu.memory_space<vmem>>, %arg6: memref<16x32xf32, #tpu.memory_space<vmem>>, %arg7: memref<16x8xf32, #tpu.memory_space<vmem>>, %arg8: memref<16x8xf32, #tpu.memory_space<vmem>>, %arg9: memref<16x32xf32, #tpu.memory_space<vmem>>) attributes {dimension_semantics = [], scalar_prefetch = 0 : i64, scratch_operands = 0 : i64, tpu.core_type = #tpu.core_type<tc>} {
    %c0 = arith.constant 0 : index
    %c0_0 = arith.constant 0 : index
    %0 = vector.load %arg0[%c0, %c0_0] : memref<16x16xf32, #tpu.memory_space<vmem>>, vector<16x16xf32>
    %c0_1 = arith.constant 0 : index
    %c0_2 = arith.constant 0 : index
    %1 = vector.load %arg1[%c0_1, %c0_2] : memref<16x32xf32, #tpu.memory_space<vmem>>, vector<16x32xf32>
    %c0_3 = arith.constant 0 : index
    %c0_4 = arith.constant 0 : index
    %2 = vector.load %arg2[%c0_3, %c0_4] : memref<32x16xf32, #tpu.memory_space<vmem>>, vector<32x16xf32>
    %cst = arith.constant dense<0.000000e+00> : vector<16x16xf32>
    %3 = tpu.matmul %1, %2, %cst {dimension_numbers = #tpu.dot_dimension_numbers<[1], [0], [0], [1], [0, 0, 1, 1], [], []>} : vector<16x32xf32>, vector<32x16xf32>, vector<16x16xf32> -> vector<16x16xf32>
    %cst_5 = arith.constant dense<0.000000e+00> : vector<16x16xf32>
    %4 = tpu.matmul %0, %3, %cst_5 {dimension_numbers = #tpu.dot_dimension_numbers<[1], [0], [0], [1], [0, 0, 1, 1], [], []>} : vector<16x16xf32>, vector<16x16xf32>, vector<16x16xf32> -> vector<16x16xf32>
    %cst_6 = arith.constant 0.000000e+00 : f32
    %5 = vector.broadcast %cst_6 : f32 to vector<16x16xf32>
    %6 = arith.maximumf %4, %5 : vector<16x16xf32>
    %cst_7 = arith.constant dense<0.000000e+00> : vector<16x16xf32>
    %7 = tpu.matmul %0, %6, %cst_7 {dimension_numbers = #tpu.dot_dimension_numbers<[1], [0], [0], [1], [0, 0, 1, 1], [], []>} : vector<16x16xf32>, vector<16x16xf32>, vector<16x16xf32> -> vector<16x16xf32>
    %c0_8 = arith.constant 0 : index
    %c0_9 = arith.constant 0 : index
    %8 = vector.load %arg3[%c0_8, %c0_9] : memref<16x8xf32, #tpu.memory_space<vmem>>, vector<16x8xf32>
    %cst_10 = arith.constant dense<0.000000e+00> : vector<16x8xf32>
    %9 = tpu.matmul %7, %8, %cst_10 {dimension_numbers = #tpu.dot_dimension_numbers<[1], [0], [0], [1], [0, 0, 1, 1], [], []>} : vector<16x16xf32>, vector<16x8xf32>, vector<16x8xf32> -> vector<16x8xf32>
    %10 = arith.negf %9 : vector<16x8xf32>
    %11 = math.exp %10 : vector<16x8xf32>
    %cst_11 = arith.constant 1.000000e+00 : f32
    %12 = vector.broadcast %cst_11 : f32 to vector<16x8xf32>
    %13 = arith.addf %12, %11 : vector<16x8xf32>
    %14 = arith.divf %12, %13 : vector<16x8xf32>
    %c0_12 = arith.constant 0 : index
    %c0_13 = arith.constant 0 : index
    %15 = vector.load %arg4[%c0_12, %c0_13] : memref<16x8xf32, #tpu.memory_space<vmem>>, vector<16x8xf32>
    %cst_14 = arith.constant dense<0.000000e+00> : vector<16x8xf32>
    %16 = tpu.matmul %7, %15, %cst_14 {dimension_numbers = #tpu.dot_dimension_numbers<[1], [0], [0], [1], [0, 0, 1, 1], [], []>} : vector<16x16xf32>, vector<16x8xf32>, vector<16x8xf32> -> vector<16x8xf32>
    %17 = arith.negf %16 : vector<16x8xf32>
    %18 = math.exp %17 : vector<16x8xf32>
    %cst_15 = arith.constant 1.000000e+00 : f32
    %19 = vector.broadcast %cst_15 : f32 to vector<16x8xf32>
    %20 = arith.addf %19, %18 : vector<16x8xf32>
    %21 = arith.divf %19, %20 : vector<16x8xf32>
    %c0_16 = arith.constant 0 : index
    %c0_17 = arith.constant 0 : index
    %22 = vector.load %arg7[%c0_16, %c0_17] : memref<16x8xf32, #tpu.memory_space<vmem>>, vector<16x8xf32>
    tpu.vector_store %arg7[%c0_16, %c0_17], %14 {strides = array<i32>} : memref<16x8xf32, #tpu.memory_space<vmem>>, vector<16x8xf32>,
    %c0_18 = arith.constant 0 : index
    %c0_19 = arith.constant 0 : index
    %23 = vector.load %arg8[%c0_18, %c0_19] : memref<16x8xf32, #tpu.memory_space<vmem>>, vector<16x8xf32>
    tpu.vector_store %arg8[%c0_18, %c0_19], %21 {strides = array<i32>} : memref<16x8xf32, #tpu.memory_space<vmem>>, vector<16x8xf32>,
    %cst_20 = arith.constant dense<0.000000e+00> : vector<16x8xf32>
    %24 = tpu.matmul %0, %14, %cst_20 {dimension_numbers = #tpu.dot_dimension_numbers<[1], [0], [0], [1], [0, 0, 1, 1], [], []>} : vector<16x16xf32>, vector<16x8xf32>, vector<16x8xf32> -> vector<16x8xf32>
    %c0_21 = arith.constant 0 : index
    %c0_22 = arith.constant 0 : index
    %25 = vector.load %arg5[%c0_21, %c0_22] : memref<8x16xf32, #tpu.memory_space<vmem>>, vector<8x16xf32>
    %cst_23 = arith.constant dense<0.000000e+00> : vector<16x16xf32>
    %26 = tpu.matmul %24, %25, %cst_23 {dimension_numbers = #tpu.dot_dimension_numbers<[1], [0], [0], [1], [0, 0, 1, 1], [], []>} : vector<16x8xf32>, vector<8x16xf32>, vector<16x16xf32> -> vector<16x16xf32>
    %cst_24 = arith.constant 0.000000e+00 : f32
    %27 = vector.broadcast %cst_24 : f32 to vector<16x16xf32>
    %28 = arith.maximumf %26, %27 : vector<16x16xf32>
    %cst_25 = arith.constant dense<0.000000e+00> : vector<16x16xf32>
    %29 = tpu.matmul %0, %28, %cst_25 {dimension_numbers = #tpu.dot_dimension_numbers<[1], [0], [0], [1], [0, 0, 1, 1], [], []>} : vector<16x16xf32>, vector<16x16xf32>, vector<16x16xf32> -> vector<16x16xf32>
    %c0_26 = arith.constant 0 : index
    %c0_27 = arith.constant 0 : index
    %30 = vector.load %arg6[%c0_26, %c0_27] : memref<16x32xf32, #tpu.memory_space<vmem>>, vector<16x32xf32>
    %cst_28 = arith.constant dense<0.000000e+00> : vector<16x32xf32>
    %31 = tpu.matmul %29, %30, %cst_28 {dimension_numbers = #tpu.dot_dimension_numbers<[1], [0], [0], [1], [0, 0, 1, 1], [], []>} : vector<16x16xf32>, vector<16x32xf32>, vector<16x32xf32> -> vector<16x32xf32>
    %32 = arith.negf %31 : vector<16x32xf32>
    %33 = math.exp %32 : vector<16x32xf32>
    %cst_29 = arith.constant 1.000000e+00 : f32
    %34 = vector.broadcast %cst_29 : f32 to vector<16x32xf32>
    %35 = arith.addf %34, %33 : vector<16x32xf32>
    %36 = arith.divf %34, %35 : vector<16x32xf32>
    %c0_30 = arith.constant 0 : index
    %c0_31 = arith.constant 0 : index
    %37 = vector.load %arg9[%c0_30, %c0_31] : memref<16x32xf32, #tpu.memory_space<vmem>>, vector<16x32xf32>
    tpu.vector_store %arg9[%c0_30, %c0_31], %36 {strides = array<i32>} : memref<16x32xf32, #tpu.memory_space<vmem>>, vector<16x32xf32>,
    return
  }
}

</mosaic_0001>

<bundles_post_ra>
// kernel: tpu_custom_call.1
= control target key start
LH: loop header
LB: loop body
LE: loop exit
PB: predicated region body
PF: predicated region fallthrough
CT: control target
= control target key end

     0   :  { %vm38_vm0 = vcmask 261120   ;;  %s1147_s0 = inlined_call_operand.vmem [shape: f32[16,16], index: 0, kind: input, shape index: {}]   ;;  %s1148_s1 = inlined_call_operand.vmem [shape: f32[16,32], index: 1, kind: input, shape index: {}]   ;;  %s1149_s2 = inlined_call_operand.vmem [shape: f32[32,16], index: 2, kind: input, shape index: {}]   ;;  %s1150_s3 = inlined_call_operand.vmem [shape: f32[16,8], index: 3, kind: input, shape index: {}]   ;;  %s1151_s4 = inlined_call_operand.vmem [shape: f32[16,8], index: 4, kind: input, shape index: {}]   ;;  %s1152_s5 = inlined_call_operand.vmem [shape: f32[8,16], index: 5, kind: input, shape index: {}]   ;;  %s1153_s6 = inlined_call_operand.vmem [shape: f32[16,32], index: 6, kind: input, shape index: {}]   ;;  %s1154_s7 = inlined_call_operand.vmem [shape: f32[16,8], index: 7, kind: output, shape index: {0}]   ;;  %s1155_s8 = inlined_call_operand.vmem [shape: f32[16,8], index: 8, kind: output, shape index: {1}]   ;;  %s1156_s9 = inlined_call_operand.hbm [shape: f32[16,32], index: 9, kind: output, shape index: {2}]  }
   0x1   :  { %v37_v0 = vld [vmem:[%s1149_s2 + $0x18] sm:$0xff]  ;;  %v36_v1 = vld [vmem:[%s1149_s2 + $0x10] sm:$0xff]  ;;  %v32_v2 = vld [vmem:[%s1148_s1] sm:$0xff] }
   0x2   :  { %884 = vmatprep.subr.mxu0 %v37_v0  ;;  %v35_v3 = vld [vmem:[%s1149_s2 + $0x8] sm:$0xff]  ;;  %892 = vmatprep.mubr.msk.f32.mxu0 %vm38_vm0, %v32_v2 }
   0x3   :  { %885 = vmatpush3.msra.mxu0 %v37_v0 }
   0x4   :  { %15 = vsyncpa [#allocation3], 0  ;;  %886 = vmatprep.subr.mxu0 %v36_v1  ;;  %v34_v4 = vld [vmem:[%s1149_s2] sm:$0xff]  ;;  %v33_v5 = vld [vmem:[%s1148_s1 + $0x8] sm:$0xff]  ;;  %vm120_vm1 = vcmask 130048   ;;  %vm463_vm2 = vcmask 64512  }
   0x5   :  { %887 = vmatpush3.msra.mxu0 %v36_v1  ;;  %v1074_v6 = vld [vmem:[%s1147_s0] sm:$0xff]  ;;  %v1081_v9 = vld [vmem:[%s1147_s0 + $0x8] sm:$0xff] }
   0x6   :  { %888 = vmatprep.subr.mxu0 %v35_v3  ;;  %899 = vmatprep.mubr.msk.f32.mxu1 %vm120_vm1, %v1074_v6  ;;  %v280_v14 = vld [vmem:[%s1150_s3 + $0x8] sm:$0xff]  ;;  %v279_v16 = vld [vmem:[%s1150_s3] sm:$0xff] }
   0x7   :  { %889 = vmatpush3.msra.mxu0 %v35_v3  ;;  %v375_v15 = vld [vmem:[%s1151_s4 + $0x8] sm:$0xff]  ;;  %v374_v17 = vld [vmem:[%s1151_s4] sm:$0xff] }
   0x8   :  { %890 = vmatprep.subr.mxu0 %v34_v4  ;;  %v543_v40 = vld [vmem:[%s1152_s5] sm:$0xff]  ;;  %v703_v47 = vld [vmem:[%s1153_s6 + $0x8] sm:$0xff] }
   0x9   :  { %891 = vmatpush3.msra.mxu0 %v34_v4  ;;  %v702_v48 = vld [vmem:[%s1153_s6] sm:$0xff]  ;;  %s998_s6 = smov [#allocation2]  }
   0xa   :  { %893 = vmatmul.mubr.msk.f32.vlgmr.msra.gmra.mxu0 %vm38_vm0, %v33_v5  ;;  %909 = vmatprep.subr.mxu0 %v280_v14  ;;  %s808_s18 = sshll.u32 %s998_s6, 4  ;;  %s809_s18 = int_to_ptr.vmem [resolvable:$true] %s808_s18 }
   0xb   :  { %910 = vmatpush3.msra.mxu0 %v280_v14  ;;  %s976_s19 = scalar_lea.vmem %s809_s18, 256  ;;  %p981_p1 = scmp.lt.s32.totalorder %s809_s18, %s809_s18 }
   0xc   :  { %911 = vmatprep.subr.mxu0 %v279_v16  ;;  %p977_p0 = scmp.ne.s32.totalorder %s809_s18, %s976_s19  ;;  %p982_p2 = scmp.lt.s32.totalorder %s976_s19, %s976_s19 }
   0xd   :  { %912 = vmatpush3.msra.mxu0 %v279_v16 }
   0xe   :  { %p983_p3 = por %p982_p2, %p981_p1 }
  0x10   :  { %p984_p4 = pnand %p983_p3, %p977_p0 }
  0xca   :  { %v894_v7 = vpop.f32.mrf.mxu0 }
  0xcb   :  { %895 = vmatprep.subr.mxu1 %v894_v7 }
  0xcc   :  { %v111_v8 = vpop.f32.mrf.mxu0  ;;  %896 = vmatpush3.msra.mxu1 %v894_v7 }
  0xcd   :  { %897 = vmatprep.subr.mxu1 %v111_v8 }
  0xce   :  { %898 = vmatpush3.msra.mxu1 %v111_v8 }
  0xcf   :  { %900 = vmatmul.mubr.msk.f32.vlgmr.msra.gmra.mxu1 %vm120_vm1, %v1081_v9 }
  0xd0   :  { %906 = vmatprep.mubr.msk.f32.mxu1 %vm120_vm1, %v1074_v6 }
 0x18f   :  { %v901_v10 = vpop.f32.mrf.mxu1 }
 0x190   :  { %v203_v11 = vmax.f32 %v901_v10, 0.0 }
 0x191   :  { %v193_v12 = vpop.f32.mrf.mxu1 }
 0x192   :  { %v202_v13 = vmax.f32 %v193_v12, 0.0  ;;  %902 = vmatprep.subr.mxu1 %v203_v11 }
 0x193   :  { %903 = vmatpush3.msra.mxu1 %v203_v11 }
 0x194   :  { %904 = vmatprep.subr.mxu1 %v202_v13 }
 0x195   :  { %905 = vmatpush3.msra.mxu1 %v202_v13 }
 0x196   :  { %907 = vmatmul.mubr.msk.f32.vlgmr.msra.gmra.mxu1 %vm120_vm1, %v1081_v9  ;;  %916 = vmatprep.subr.mxu1 %v375_v15 }
 0x197   :  { %917 = vmatpush3.msra.mxu1 %v375_v15 }
 0x198   :  { %918 = vmatprep.subr.mxu1 %v374_v17 }
 0x199   :  { %919 = vmatpush3.msra.mxu1 %v374_v17 }
 0x19a   :  { %930 = vmatprep.subr.mxu1 %v543_v40 }
 0x256   :  { %v908_v18 = vpop.f32.mrf.mxu1 }
 0x258   :  { %v270_v19 = vpop.f32.mrf.mxu1 }
 0x259   :  { %913 = vmatprep.mubr.msk.f32.mxu0 %vm120_vm1, %v270_v19  ;;  %920 = vmatprep.mubr.msk.f32.mxu1 %vm120_vm1, %v270_v19 }
 0x25a   :  { %914 = vmatmul.mubr.msk.f32.vlgmr.msra.gmra.mxu0 %vm120_vm1, %v908_v18  ;;  %921 = vmatmul.mubr.msk.f32.vlgmr.msra.gmra.mxu1 %vm120_vm1, %v908_v18 }
 0x25b   :  { %927 = vmatprep.mubr.msk.f32.mxu0 %vm120_vm1, %v1074_v6  ;;  %931 = vmatpush3.msra.mxu1 %v543_v40 }
 0x25c   :  { %942 = vmatprep.subr.mxu1 %v703_v47 }
 0x31a   :  { %v915_v20 = vpop.f32.mrf.mxu0  ;;  %v922_v21 = vpop.f32.mrf.mxu1 }
 0x31b   :  { %v832_v22 = vmul.f32 -1.442695, %v915_v20  ;;  %v836_v23 = vmul.f32 -1.442695, %v922_v21 }
 0x31c   :  { %v353_v24 = vpop.f32.mrf.mxu0  ;;  %v442_v25 = vpop.f32.mrf.mxu1 }
 0x31d   :  { %952 = vpow2.f32 %v832_v22  ;;  %v831_v26 = vmul.f32 -1.442695, %v353_v24  ;;  %v835_v27 = vmul.f32 -1.442695, %v442_v25 }
 0x31e   :  { %954 = vpow2.f32 %v836_v23 }
 0x31f   :  { %956 = vpow2.f32 %v831_v26 }
 0x320   :  { %958 = vpow2.f32 %v835_v27 }
 0x32a   :  { %v953_v28 = vpop.eup %952 }
 0x32b   :  { %v955_v29 = vpop.eup %954  ;;  %v369_v30 = vadd.f32 1.0, %v953_v28 }
 0x32c   :  { %v957_v31 = vpop.eup %956  ;;  %v458_v32 = vadd.f32 1.0, %v955_v29 }
 0x32d   :  { %v959_v33 = vpop.eup %958  ;;  %960 = vrcp.f32 %v369_v30  ;;  %v368_v34 = vadd.f32 1.0, %v957_v31 }
 0x32e   :  { %962 = vrcp.f32 %v458_v32  ;;  %v457_v35 = vadd.f32 1.0, %v959_v33 }
 0x32f   :  { %964 = vrcp.f32 %v368_v34 }
 0x330   :  { %966 = vrcp.f32 %v457_v35 }
 0x33a   :  { %v961_v36 = vpop.eup %960 }
 0x33b   :  { %v963_v37 = vpop.eup %962  ;;  %923 = vmatprep.subr.mxu0 %v961_v36  ;;  %465 = vst.msk [vmem:[%s1154_s7 + $0x8] sm:$0xff] %vm463_vm2, %v961_v36 }
 0x33c   :  { %v965_v38 = vpop.eup %964  ;;  %924 = vmatpush3.msra.mxu0 %v961_v36  ;;  %467 = vst.msk [vmem:[%s1155_s8 + $0x8] sm:$0xff] %vm463_vm2, %v963_v37 }
 0x33d   :  { %v967_v39 = vpop.eup %966  ;;  %925 = vmatprep.subr.mxu0 %v965_v38  ;;  %464 = vst.msk [vmem:[%s1154_s7] sm:$0xff] %vm463_vm2, %v965_v38 }
 0x33e   :  { %926 = vmatpush3.msra.mxu0 %v965_v38  ;;  %466 = vst.msk [vmem:[%s1155_s8] sm:$0xff] %vm463_vm2, %v967_v39 }
 0x33f   :  { %928 = vmatmul.mubr.msk.f32.vlgmr.msra.gmra.mxu0 %vm120_vm1, %v1081_v9 }
 0x340   :  { %939 = vmatprep.mubr.msk.f32.mxu0 %vm120_vm1, %v1074_v6 }
 0x3ff   :  { %v929_v41 = vpop.f32.mrf.mxu0 }
 0x401   :  { %v534_v42 = vpop.f32.mrf.mxu0 }
 0x402   :  { %932 = vmatprep.mubr.msk.f32.mxu1 %vm463_vm2, %v534_v42 }
 0x403   :  { %933 = vmatmul.mubr.msk.f32.vlgmr.msra.gmra.mxu1 %vm463_vm2, %v929_v41 }
 0x404   :  { %943 = vmatpush3.msra.mxu1 %v703_v47 }
 0x405   :  { %944 = vmatprep.subr.mxu1 %v702_v48 }
 0x406   :  { %945 = vmatpush3.msra.mxu1 %v702_v48 }
 0x4c3   :  { %v934_v43 = vpop.f32.mrf.mxu1 }
 0x4c4   :  { %v626_v44 = vmax.f32 %v934_v43, 0.0 }
 0x4c5   :  { %v616_v45 = vpop.f32.mrf.mxu1 }
 0x4c6   :  { %v625_v46 = vmax.f32 %v616_v45, 0.0  ;;  %935 = vmatprep.subr.mxu0 %v626_v44 }
 0x4c7   :  { %936 = vmatpush3.msra.mxu0 %v626_v44 }
 0x4c8   :  { %937 = vmatprep.subr.mxu0 %v625_v46 }
 0x4c9   :  { %938 = vmatpush3.msra.mxu0 %v625_v46 }
 0x4ca   :  { %940 = vmatmul.mubr.msk.f32.vlgmr.msra.gmra.mxu0 %vm120_vm1, %v1081_v9 }
 0x58a   :  { %v941_v49 = vpop.f32.mrf.mxu0 }
 0x58c   :  { %v693_v50 = vpop.f32.mrf.mxu0 }
 0x58d   :  { %946 = vmatprep.mubr.msk.f32.mxu1 %vm120_vm1, %v693_v50 }
 0x58e   :  { %947 = vmatmul.mubr.msk.f32.vlgmr.msra.gmra.mxu1 %vm120_vm1, %v941_v49 }
 0x64e   :  { %v948_v51 = vpop.f32.mrf.mxu1 }
 0x64f   :  { %v846_v52 = vmul.f32 -1.442695, %v948_v51 }
 0x650   :  { %v776_v53 = vpop.f32.mrf.mxu1 }
 0x651   :  { %968 = vpow2.f32 %v846_v52  ;;  %v845_v54 = vmul.f32 -1.442695, %v776_v53 }
 0x653   :  { %970 = vpow2.f32 %v845_v54 }
 0x65e   :  { %v969_v55 = vpop.eup %968 }
 0x65f   :  { %v792_v56 = vadd.f32 1.0, %v969_v55 }
 0x660   :  { %v971_v57 = vpop.eup %970 }
 0x661   :  { %972 = vrcp.f32 %v792_v56  ;;  %v791_v58 = vadd.f32 1.0, %v971_v57 }
 0x663   :  { %974 = vrcp.f32 %v791_v58 }
 0x66e   :  { %v973_v59 = vpop.eup %972 }
 0x66f   :  { %798 = vst.msk [vmem:[#allocation2 + $0x8] sm:$0xff] %vm38_vm0, %v973_v59 }
 0x670   :  { %v975_v60 = vpop.eup %974 }
 0x671   :  { %797 = vst.msk [vmem:[#allocation2] sm:$0xff] %vm38_vm0, %v975_v60 }
 0x672   :  { %987 = shalt.err (!%p984_p4)
}
 0x673   :  { %s999_s20 = smov 128   ;;  %s1000_s21 = smov 8  }
 0x674   :  { %814 = dma.vmem_to_hbm [thread:$0]  %s809_s18, 256, %s1156_s9, [#allocation3], %s999_s20, %s999_s20, %s1000_s21  }
 0x675   :  { %996 = dma.done.wait [#allocation3], 256  }
 0x676   :  { %997 = vsyncadd [#allocation3], 4294967040 }
 0x677   :  { %822 = vsyncpa [#allocation3], 1 }

</bundles_post_ra>
